<compile_context>
chip_gen: v7x
topology: tpu7x:2x2x1
jax: 0.10.0
libtpu: 0.0.40
codegen_flags: <defaults>
</compile_context>

<pallas_src>
import functools

import jax
import jax.numpy as jnp
from jax.experimental import pallas as pl
from jax.experimental.pallas import tpu as pltpu


def _round_up(a: int, b: int) -> int:
    return (a + b - 1) // b * b


def _vmem_capacity_bytes() -> int:
    """Per-core VMEM capacity; conservative 64 MiB fallback if the query fails."""
    try:
        info = pltpu.get_tpu_info()
        for attr in ("vmem_capacity_bytes", "vmem_bytes", "vmem_size_bytes"):
            v = getattr(info, attr, None)
            if v:
                return int(v)
    except Exception:
        pass
    try:
        kind = jax.devices()[0].device_kind.lower()
        if "7" in kind:                       # v7x: 64 MiB per TensorCore
            return 64 * 1024 * 1024
        if any(t in kind for t in ("v4", "v5", "v6")):
            return 128 * 1024 * 1024          # v4/v5e/v6e: 128 MiB
    except Exception:
        pass
    return 64 * 1024 * 1024


def _pick_tn(d_pad: int, tm: int, w_itemsize: int, io_itemsize: int,
             vmem_limit: int) -> int:
    """Largest gate-column tile (multiple of 128 dividing d_pad) whose *double-buffered*
    footprint (Wu+Wr tiles, x rows, y/out tiles, f32 epilogue temporaries) fits under
    the scoped-VMEM limit with headroom for Mosaic internal scratch."""
    budget = vmem_limit - 4 * 1024 * 1024
    q = d_pad // 128
    candidates = sorted({128 * k for k in range(1, q + 1) if q % k == 0}, reverse=True)
    for tn in candidates:
        w_bytes = 2 * 2 * d_pad * tn * w_itemsize    # Wu + Wr, 2 buffers each
        x_bytes = 2 * tm * d_pad * io_itemsize       # x rows, 2 buffers
        yo_bytes = 2 * 2 * tm * tn * io_itemsize     # y + out, 2 buffers each
        tmp_bytes = 6 * tm * tn * 4                  # f32 gate/blend temporaries (rough)
        b_bytes = 2 * 2 * 2 * tn * 4                 # biases
        if w_bytes + x_bytes + yo_bytes + tmp_bytes + b_bytes <= budget:
            return tn
    return 128


def _resgate_kernel(x_ref, y_ref, wu_ref, wr_ref, bu_ref, br_ref, o_ref, *, dot_dtype):
    """One (gate-column-tile, row-tile) step.

    x_ref       : (tm, d_pad)   full token rows (matmul LHS), model dtype
    y_ref       : (tm, tn)      column tile of y, model dtype
    wu_ref/wr_ref : (d_pad, tn) column tiles of the gate weights, dot dtype
    bu_ref/br_ref : (1, tn)     bias tiles, float32
    o_ref       : (tm, tn)      output tile, model dtype
    """
    tn = o_ref.shape[-1]
    d_pad = x_ref.shape[-1]

    x = x_ref[...]
    xd = x if x.dtype == dot_dtype else x.astype(dot_dtype)   # opt-in bf16 MXU operands

    # Two MXU dots (same LHS), f32 accumulation, fused bias adds.
    u_pre = jnp.dot(xd, wu_ref[...], preferred_element_type=jnp.float32) + bu_ref[...]
    r_pre = jnp.dot(xd, wr_ref[...], preferred_element_type=jnp.float32) + br_ref[...]

    # sigmoid(t) = 0.5 * tanh(0.5 * t) + 0.5  — one EUP op per gate, no exp/reciprocal.
    u = 0.5 * jnp.tanh(0.5 * u_pre) + 0.5     # update gate -> multiplies y
    r = 0.5 * jnp.tanh(0.5 * r_pre) + 0.5     # reset  gate -> multiplies x

    if tn == d_pad:
        xc = x                                # fully resident weights, no column slicing
    else:
        # Column axis is grid dim 0 in the tiled path; slices land on 128-lane boundaries.
        col = pl.multiple_of(pl.program_id(0) * tn, 128)
        xc = x_ref[:, pl.ds(col, tn)]

    # Blend once in f32, cast once at the store.
    z = r * xc.astype(jnp.float32) + u * y_ref[...].astype(jnp.float32)
    o_ref[...] = z.astype(o_ref.dtype)


@functools.partial(jax.jit, static_argnames=("tm", "gate_dot_dtype"))
def residual_gate(x, y, wu, bu, wr, br, *, tm=None, gate_dot_dtype=None):
    """ResidualGate forward (reset-update / linear-bias / sigmoid).

    x, y   : (..., d_model), f32 or bf16
    wu, wr : (d_model, d_model), x @ W convention (PyTorch nn.Linear weight transposed)
    bu, br : (d_model,)
    gate_dot_dtype : optional dtype (e.g. jnp.bfloat16) for the gate matmul operands
                     only; accumulation, bias, sigmoid and the blend stay f32.
    Returns z = sigmoid(x@Wr+br) * x + sigmoid(x@Wu+bu) * y in x.dtype.
    """
    orig_shape = x.shape
    d = orig_shape[-1]
    out_dtype = x.dtype

    x2 = x.reshape(-1, d)
    y2 = y.reshape(-1, d)
    M = x2.shape[0]

    # --- generation-aware sizing -------------------------------------------------
    vmem_cap = _vmem_capacity_bytes()
    big_vmem = vmem_cap >= 96 * 1024 * 1024
    vmem_limit = (vmem_cap * 3) // 4          # 96 MiB on v5e/v6e, 48 MiB on v7x

    d_pad = _round_up(d, 128)                 # lane-dense loads/stores, no vst.msk tail
    if tm is None:
        tm = 512 if big_vmem else 256
    tm_eff = _round_up(min(tm, _round_up(M, 16)), 16)   # no over-padding of tiny M
    M_pad = _round_up(M, tm_eff)

    io_itemsize = jnp.dtype(out_dtype).itemsize
    w_dtype = gate_dot_dtype if gate_dot_dtype is not None else x.dtype
    w_itemsize = jnp.dtype(w_dtype).itemsize

    tn = _pick_tn(d_pad, tm_eff, w_itemsize, io_itemsize, vmem_limit)
    nct = d_pad // tn

    # --- padding (zeros keep the padded region exactly zero: gate=0.5 * 0) --------
    if (M_pad, d_pad) != (M, d):
        x2 = jnp.pad(x2, ((0, M_pad - M), (0, d_pad - d)))
        y2 = jnp.pad(y2, ((0, M_pad - M), (0, d_pad - d)))

    # No host-side re-layout: plain padded weights; BlockSpec does the column tiling.
    def prep_w(w):
        return jnp.pad(w, ((0, d_pad - d), (0, d_pad - d))).astype(w_dtype)

    def prep_b(b):
        return jnp.pad(b, (0, d_pad - d)).astype(jnp.float32).reshape(1, d_pad)

    wu_p, wr_p = prep_w(wu), prep_w(wr)
    bu_p, br_p = prep_b(bu), prep_b(br)

    n_rows = M_pad // tm_eff

    if nct == 1:
        # Fused weights fully resident across the whole grid; rows megacore-parallel.
        grid = (n_rows,)
        dim_sem = ("parallel",)
        row = lambda i: (i, 0)
        const = lambda i: (0, 0)
        in_specs = [
            pl.BlockSpec((tm_eff, d_pad), row),        # x
            pl.BlockSpec((tm_eff, d_pad), row),        # y
            pl.BlockSpec((d_pad, d_pad), const),       # Wu (resident)
            pl.BlockSpec((d_pad, d_pad), const),       # Wr (resident)
            pl.BlockSpec((1, d_pad), const),           # bu
            pl.BlockSpec((1, d_pad), const),           # br
        ]
        out_spec = pl.BlockSpec((tm_eff, d_pad), row)
    else:
        # Column axis OUTER, rows INNER: each weight column tile is DMA'd once and
        # stays resident across the row sweep; x rows are re-read nct times instead.
        grid = (nct, n_rows)
        dim_sem = ("arbitrary", "arbitrary")
        in_specs = [
            pl.BlockSpec((tm_eff, d_pad), lambda j, i: (i, 0)),   # x full rows
            pl.BlockSpec((tm_eff, tn), lambda j, i: (i, j)),      # y column tile
            pl.BlockSpec((d_pad, tn), lambda j, i: (0, j)),       # Wu tile (resident over i)
            pl.BlockSpec((d_pad, tn), lambda j, i: (0, j)),       # Wr tile (resident over i)
            pl.BlockSpec((1, tn), lambda j, i: (0, j)),           # bu tile
            pl.BlockSpec((1, tn), lambda j, i: (0, j)),           # br tile
        ]
        out_spec = pl.BlockSpec((tm_eff, tn), lambda j, i: (i, j))

    cost = pl.CostEstimate(
        flops=4 * M_pad * d_pad * d_pad,                       # two (M,d)x(d,d) matmuls
        transcendentals=2 * M_pad * d_pad,                     # two tanh per element
        bytes_accessed=(3 * M_pad * d_pad * io_itemsize        # x, y, out
                        + 2 * d_pad * d_pad * w_itemsize       # Wu, Wr (streamed once)
                        + 2 * d_pad * 4),                      # biases
    )

    kernel = functools.partial(_resgate_kernel, dot_dtype=jnp.dtype(w_dtype))

    out = pl.pallas_call(
        kernel,
        out_shape=jax.ShapeDtypeStruct((M_pad, d_pad), out_dtype),
        grid_spec=pltpu.PrefetchScalarGridSpec(
            num_scalar_prefetch=0,
            grid=grid,
            in_specs=in_specs,
            out_specs=out_spec,
        ),
        compiler_params=pltpu.CompilerParams(
            dimension_semantics=dim_sem,
            vmem_limit_bytes=int(vmem_limit),
        ),
        cost_estimate=cost,
    )(x2, y2, wu_p, wr_p, bu_p, br_p)

    return out[:M, :d].reshape(orig_shape)


def reference(x, y, wu, bu, wr, br):
    u = jax.nn.sigmoid(x @ wu + bu)
    r = jax.nn.sigmoid(x @ wr + br)
    return r * x + u * y


if __name__ == "__main__":
    batch, seq, d_model = 2, 8, 32
    bias_init_val = 0.0

    key = jax.random.PRNGKey(0)
    kx, ky, kwu, kwr = jax.random.split(key, 4)

    x = jax.random.normal(kx, (batch, seq, d_model), dtype=jnp.float32)
    y = jax.random.normal(ky, (batch, seq, d_model), dtype=jnp.float32)

    # nn.Linear(d_model, d_model)-shaped params, stored as (d_in, d_out) = W^T.
    bound = 1.0 / (d_model ** 0.5)
    wu = jax.random.uniform(kwu, (d_model, d_model), minval=-bound, maxval=bound,
                            dtype=jnp.float32)
    wr = jax.random.uniform(kwr, (d_model, d_model), minval=-bound, maxval=bound,
                            dtype=jnp.float32)
    bu = jnp.full((d_model,), 1.0 * bias_init_val, dtype=jnp.float32)  # init_bias sign=+1
    br = jnp.full((d_model,), 1.0 * bias_init_val, dtype=jnp.float32)  # init_bias sign=+1

    # --- f32 path: exact check vs reference ---------------------------------
    z = residual_gate(x, y, wu, bu, wr, br)
    jax.block_until_ready(z)
    z_ref = reference(x, y, wu, bu, wr, br)
    assert z.shape == x.shape
    assert jnp.allclose(z, z_ref, atol=5e-5, rtol=5e-5), "f32 mismatch vs reference"

    # --- f32 I/O with opt-in bf16 matmul operands (gate pre-activation only) --
    zq = residual_gate(x, y, wu, bu, wr, br, gate_dot_dtype=jnp.bfloat16)
    jax.block_until_ready(zq)
    assert jnp.allclose(zq, z_ref, atol=5e-2, rtol=5e-2), "bf16-dot opt-in mismatch"

    # --- bf16 path: model-dtype I/O + bf16 MXU operands, f32 accumulation ----
    xb = x.astype(jnp.bfloat16)
    yb = y.astype(jnp.bfloat16)
    zb = residual_gate(xb, yb, wu, bu, wr, br)
    jax.block_until_ready(zb)
    z_ref_b = reference(xb.astype(jnp.float32), yb.astype(jnp.float32),
                        wu.astype(jnp.bfloat16).astype(jnp.float32), bu,
                        wr.astype(jnp.bfloat16).astype(jnp.float32), br)
    assert zb.dtype == jnp.bfloat16
    assert jnp.allclose(zb.astype(jnp.float32), z_ref_b, atol=5e-2, rtol=5e-2), \
        "bf16 mismatch vs reference"

    print("KERNEL_OK")
</pallas_src>

<mosaic_0001>
module attributes {stable_mosaic.version = 11 : i64} {
  func.func @_resgate_kernel(%arg0: i32, %arg1: memref<16x128xf32, #tpu.memory_space<vmem>>, %arg2: memref<16x128xf32, #tpu.memory_space<vmem>>, %arg3: memref<128x128xf32, #tpu.memory_space<vmem>>, %arg4: memref<128x128xf32, #tpu.memory_space<vmem>>, %arg5: memref<1x128xf32, #tpu.memory_space<vmem>>, %arg6: memref<1x128xf32, #tpu.memory_space<vmem>>, %arg7: memref<16x128xf32, #tpu.memory_space<vmem>>) attributes {dimension_semantics = [#tpu.dimension_semantics<parallel>], iteration_bounds = array<i64: 1>, scalar_prefetch = 0 : i64, scratch_operands = 0 : i64, tpu.core_type = #tpu.core_type<tc>, window_params = [{transform_indices = @transform_0, window_bounds = array<i64: 16, 128>}, {transform_indices = @transform_1, window_bounds = array<i64: 16, 128>}, {pipeline_mode = #tpu.pipeline_mode<synchronous>, transform_indices = @transform_2, window_bounds = array<i64: 128, 128>}, {pipeline_mode = #tpu.pipeline_mode<synchronous>, transform_indices = @transform_3, window_bounds = array<i64: 128, 128>}, {pipeline_mode = #tpu.pipeline_mode<synchronous>, transform_indices = @transform_4, window_bounds = array<i64: 1, 128>}, {pipeline_mode = #tpu.pipeline_mode<synchronous>, transform_indices = @transform_5, window_bounds = array<i64: 1, 128>}, {transform_indices = @transform_6, window_bounds = array<i64: 16, 128>}]} {
    %c0 = arith.constant 0 : index
    %c0_0 = arith.constant 0 : index
    %0 = vector.load %arg1[%c0, %c0_0] : memref<16x128xf32, #tpu.memory_space<vmem>>, vector<16x128xf32>
    %c0_1 = arith.constant 0 : index
    %c0_2 = arith.constant 0 : index
    %1 = vector.load %arg3[%c0_1, %c0_2] : memref<128x128xf32, #tpu.memory_space<vmem>>, vector<128x128xf32>
    %cst = arith.constant dense<0.000000e+00> : vector<16x128xf32>
    %2 = tpu.matmul %0, %1, %cst {dimension_numbers = #tpu.dot_dimension_numbers<[1], [0], [0], [1], [0, 0, 1, 1], [], []>} : vector<16x128xf32>, vector<128x128xf32>, vector<16x128xf32> -> vector<16x128xf32>
    %c0_3 = arith.constant 0 : index
    %c0_4 = arith.constant 0 : index
    %3 = vector.load %arg5[%c0_3, %c0_4] : memref<1x128xf32, #tpu.memory_space<vmem>>, vector<1x128xf32>
    %4 = vector.broadcast %3 : vector<1x128xf32> to vector<16x128xf32>
    %5 = arith.addf %2, %4 : vector<16x128xf32>
    %c0_5 = arith.constant 0 : index
    %c0_6 = arith.constant 0 : index
    %6 = vector.load %arg4[%c0_5, %c0_6] : memref<128x128xf32, #tpu.memory_space<vmem>>, vector<128x128xf32>
    %cst_7 = arith.constant dense<0.000000e+00> : vector<16x128xf32>
    %7 = tpu.matmul %0, %6, %cst_7 {dimension_numbers = #tpu.dot_dimension_numbers<[1], [0], [0], [1], [0, 0, 1, 1], [], []>} : vector<16x128xf32>, vector<128x128xf32>, vector<16x128xf32> -> vector<16x128xf32>
    %c0_8 = arith.constant 0 : index
    %c0_9 = arith.constant 0 : index
    %8 = vector.load %arg6[%c0_8, %c0_9] : memref<1x128xf32, #tpu.memory_space<vmem>>, vector<1x128xf32>
    %9 = vector.broadcast %8 : vector<1x128xf32> to vector<16x128xf32>
    %10 = arith.addf %7, %9 : vector<16x128xf32>
    %cst_10 = arith.constant 5.000000e-01 : f32
    %11 = vector.broadcast %cst_10 : f32 to vector<16x128xf32>
    %12 = arith.mulf %11, %5 : vector<16x128xf32>
    %13 = math.tanh %12 : vector<16x128xf32>
    %cst_11 = arith.constant 5.000000e-01 : f32
    %14 = vector.broadcast %cst_11 : f32 to vector<16x128xf32>
    %15 = arith.mulf %14, %13 : vector<16x128xf32>
    %cst_12 = arith.constant 5.000000e-01 : f32
    %16 = vector.broadcast %cst_12 : f32 to vector<16x128xf32>
    %17 = arith.addf %15, %16 : vector<16x128xf32>
    %cst_13 = arith.constant 5.000000e-01 : f32
    %18 = vector.broadcast %cst_13 : f32 to vector<16x128xf32>
    %19 = arith.mulf %18, %10 : vector<16x128xf32>
    %20 = math.tanh %19 : vector<16x128xf32>
    %cst_14 = arith.constant 5.000000e-01 : f32
    %21 = vector.broadcast %cst_14 : f32 to vector<16x128xf32>
    %22 = arith.mulf %21, %20 : vector<16x128xf32>
    %cst_15 = arith.constant 5.000000e-01 : f32
    %23 = vector.broadcast %cst_15 : f32 to vector<16x128xf32>
    %24 = arith.addf %22, %23 : vector<16x128xf32>
    %25 = arith.mulf %24, %0 : vector<16x128xf32>
    %c0_16 = arith.constant 0 : index
    %c0_17 = arith.constant 0 : index
    %26 = vector.load %arg2[%c0_16, %c0_17] : memref<16x128xf32, #tpu.memory_space<vmem>>, vector<16x128xf32>
    %27 = arith.mulf %17, %26 : vector<16x128xf32>
    %28 = arith.addf %25, %27 : vector<16x128xf32>
    %c0_18 = arith.constant 0 : index
    %c0_19 = arith.constant 0 : index
    %29 = vector.load %arg7[%c0_18, %c0_19] : memref<16x128xf32, #tpu.memory_space<vmem>>, vector<16x128xf32>
    tpu.vector_store %arg7[%c0_18, %c0_19], %28 {strides = array<i32>} : memref<16x128xf32, #tpu.memory_space<vmem>>, vector<16x128xf32>,
    return
  }
  func.func @transform_0(%arg0: i32) -> (i32, i32) {
    %c0_i32 = arith.constant 0 : i32
    %c0_i32_0 = arith.constant 0 : i32
    return %arg0, %c0_i32 : i32, i32
  }
  func.func @transform_1(%arg0: i32) -> (i32, i32) {
    %c0_i32 = arith.constant 0 : i32
    %c0_i32_0 = arith.constant 0 : i32
    return %arg0, %c0_i32 : i32, i32
  }
  func.func @transform_2(%arg0: i32) -> (i32, i32) {
    %c0_i32 = arith.constant 0 : i32
    %c0_i32_0 = arith.constant 0 : i32
    %c0_i32_1 = arith.constant 0 : i32
    return %c0_i32, %c0_i32_0 : i32, i32
  }
  func.func @transform_3(%arg0: i32) -> (i32, i32) {
    %c0_i32 = arith.constant 0 : i32
    %c0_i32_0 = arith.constant 0 : i32
    %c0_i32_1 = arith.constant 0 : i32
    return %c0_i32, %c0_i32_0 : i32, i32
  }
  func.func @transform_4(%arg0: i32) -> (i32, i32) {
    %c0_i32 = arith.constant 0 : i32
    %c0_i32_0 = arith.constant 0 : i32
    %c0_i32_1 = arith.constant 0 : i32
    return %c0_i32, %c0_i32_0 : i32, i32
  }
  func.func @transform_5(%arg0: i32) -> (i32, i32) {
    %c0_i32 = arith.constant 0 : i32
    %c0_i32_0 = arith.constant 0 : i32
    %c0_i32_1 = arith.constant 0 : i32
    return %c0_i32, %c0_i32_0 : i32, i32
  }
  func.func @transform_6(%arg0: i32) -> (i32, i32) {
    %c0_i32 = arith.constant 0 : i32
    %c0_i32_0 = arith.constant 0 : i32
    return %arg0, %c0_i32 : i32, i32
  }
}

</mosaic_0001>

<bundles_post_ra>
// kernel: residual_gate.1
= control target key start
LH: loop header
LB: loop body
LE: loop exit
PB: predicated region body
PF: predicated region fallthrough
CT: control target
= control target key end

     0   :  { %s591_s2 = inlined_call_operand.vmem [shape: f32[128,128], index: 2, kind: input, shape index: {}]   ;;  %s592_s3 = inlined_call_operand.vmem [shape: f32[128,128], index: 3, kind: input, shape index: {}]   ;;  %s593_s0 = inlined_call_operand.vmem [shape: f32[16,128], index: 0, kind: input, shape index: {}]   ;;  %s594_s4 = inlined_call_operand.vmem [shape: f32[1,128], index: 4, kind: input, shape index: {}]   ;;  %s595_s5 = inlined_call_operand.vmem [shape: f32[1,128], index: 5, kind: input, shape index: {}]   ;;  %s596_s1 = inlined_call_operand.vmem [shape: f32[16,128], index: 1, kind: input, shape index: {}]   ;;  %s597_s6 = inlined_call_operand.vmem [shape: f32[16,128], index: 6, kind: output, shape index: {}]  }
   0x1   :  { %v25_v0 = vld [vmem:[%s591_s2] sm:$0xff]  ;;  %v26_v1 = vld [vmem:[%s591_s2 + $0x8] sm:$0xff]  ;;  %v27_v5 = vld [vmem:[%s591_s2 + $0x10] sm:$0xff] }
   0x2   :  { %v123_v2 = vld [vmem:[%s592_s3] sm:$0xff]  ;;  %v359_v3 = vpack.c.bf16 %v26_v1, %v25_v0  ;;  %v124_v4 = vld [vmem:[%s592_s3 + $0x8] sm:$0xff]  ;;  %v28_v6 = vld [vmem:[%s591_s2 + $0x18] sm:$0xff] }
   0x3   :  { %v391_v7 = vpack.c.bf16 %v124_v4, %v123_v2  ;;  %v363_v8 = vpack.c.bf16 %v28_v6, %v27_v5  ;;  %v125_v9 = vld [vmem:[%s592_s3 + $0x10] sm:$0xff]  ;;  %v126_v10 = vld [vmem:[%s592_s3 + $0x18] sm:$0xff]  ;;  %v29_v11 = vld [vmem:[%s591_s2 + $0x20] sm:$0xff] }
   0x4   :  { %360 = vmatprep.subr.bf16.mxu0 %v359_v3  ;;  %v395_v12 = vpack.c.bf16 %v126_v10, %v125_v9  ;;  %v30_v13 = vld [vmem:[%s591_s2 + $0x28] sm:$0xff]  ;;  %v127_v14 = vld [vmem:[%s592_s3 + $0x20] sm:$0xff]  ;;  %v31_v18 = vld [vmem:[%s591_s2 + $0x30] sm:$0xff] }
   0x5   :  { %v128_v15 = vld [vmem:[%s592_s3 + $0x28] sm:$0xff]  ;;  %392 = vmatprep.subr.bf16.mxu1 %v391_v7  ;;  %362 = vmatpush3.bf16.msra.mxu0 %v359_v3  ;;  %v367_v16 = vpack.c.bf16 %v30_v13, %v29_v11  ;;  %v32_v19 = vld [vmem:[%s591_s2 + $0x38] sm:$0xff]  ;;  %v129_v20 = vld [vmem:[%s592_s3 + $0x30] sm:$0xff] }
   0x6   :  { %394 = vmatpush3.bf16.msra.mxu1 %v391_v7  ;;  %364 = vmatprep.subr.bf16.mxu0 %v363_v8  ;;  %v399_v17 = vpack.c.bf16 %v128_v15, %v127_v14  ;;  %v130_v21 = vld [vmem:[%s592_s3 + $0x38] sm:$0xff]  ;;  %v371_v22 = vpack.c.bf16 %v32_v19, %v31_v18  ;;  %v33_v24 = vld [vmem:[%s591_s2 + $0x40] sm:$0xff]  ;;  %v34_v25 = vld [vmem:[%s591_s2 + $0x48] sm:$0xff] }
   0x7   :  { %396 = vmatprep.subr.bf16.mxu1 %v395_v12  ;;  %v403_v23 = vpack.c.bf16 %v130_v21, %v129_v20  ;;  %v523_v26 = vld [vmem:[%s593_s0] sm:$0xff]  ;;  %v132_v28 = vld [vmem:[%s592_s3 + $0x48] sm:$0xff]  ;;  %v375_v29 = vpack.c.bf16 %v34_v25, %v33_v24  ;;  %v35_v31 = vld [vmem:[%s591_s2 + $0x50] sm:$0xff] }
   0x8   :  { %v131_v27 = vld [vmem:[%s592_s3 + $0x40] sm:$0xff]  ;;  %321 = vmatprep.mubr.f32.mxu0 %v523_v26  ;;  %356 = vmatprep.mubr.f32.mxu1 %v523_v26  ;;  %v36_v32 = vld [vmem:[%s591_s2 + $0x58] sm:$0xff]  ;;  %v133_v33 = vld [vmem:[%s592_s3 + $0x50] sm:$0xff] }
   0x9   :  { %366 = vmatpush3.bf16.msra.mxu0 %v363_v8  ;;  %v407_v30 = vpack.c.bf16 %v132_v28, %v131_v27  ;;  %v134_v34 = vld [vmem:[%s592_s3 + $0x58] sm:$0xff]  ;;  %v379_v35 = vpack.c.bf16 %v36_v32, %v35_v31  ;;  %v37_v37 = vld [vmem:[%s591_s2 + $0x60] sm:$0xff]  ;;  %v38_v38 = vld [vmem:[%s591_s2 + $0x68] sm:$0xff] }
   0xa   :  { %398 = vmatpush3.bf16.msra.mxu1 %v395_v12  ;;  %368 = vmatprep.subr.bf16.mxu0 %v367_v16  ;;  %v411_v36 = vpack.c.bf16 %v134_v34, %v133_v33  ;;  %v135_v39 = vld [vmem:[%s592_s3 + $0x60] sm:$0xff]  ;;  %v136_v40 = vld [vmem:[%s592_s3 + $0x68] sm:$0xff]  ;;  %v383_v41 = vpack.c.bf16 %v38_v38, %v37_v37  ;;  %v39_v43 = vld [vmem:[%s591_s2 + $0x70] sm:$0xff] }
   0xb   :  { %400 = vmatprep.subr.bf16.mxu1 %v399_v17  ;;  %v415_v42 = vpack.c.bf16 %v136_v40, %v135_v39  ;;  %v40_v44 = vld [vmem:[%s591_s2 + $0x78] sm:$0xff]  ;;  %v137_v45 = vld [vmem:[%s592_s3 + $0x70] sm:$0xff]  ;;  %v24_v49 = vld [vmem:[%s593_s0 + $0x8] sm:$0xff] }
   0xc   :  { %v138_v46 = vld [vmem:[%s592_s3 + $0x78] sm:$0xff]  ;;  %v387_v47 = vpack.c.bf16 %v40_v44, %v39_v43  ;;  %v251_v50 = vld [vmem:[%s594_s4] ss:$0 sm:$0xff]  ;;  %v240_v4 = vld [vmem:[%s596_s1 + $0x8] sm:$0xff] }
   0xd   :  { %370 = vmatpush3.bf16.msra.mxu0 %v367_v16  ;;  %v419_v48 = vpack.c.bf16 %v138_v46, %v137_v45  ;;  %v252_v51 = vld [vmem:[%s595_s5] ss:$0 sm:$0xff] }
   0xe   :  { %402 = vmatpush3.bf16.msra.mxu1 %v399_v17  ;;  %372 = vmatprep.subr.bf16.mxu0 %v371_v22  ;;  %v239_v10 = vld [vmem:[%s596_s1] sm:$0xff] }
   0xf   :  { %404 = vmatprep.subr.bf16.mxu1 %v403_v23 }
  0x11   :  { %374 = vmatpush3.bf16.msra.mxu0 %v371_v22 }
  0x12   :  { %406 = vmatpush3.bf16.msra.mxu1 %v403_v23  ;;  %376 = vmatprep.subr.bf16.mxu0 %v375_v29 }
  0x13   :  { %408 = vmatprep.subr.bf16.mxu1 %v407_v30 }
  0x15   :  { %378 = vmatpush3.bf16.msra.mxu0 %v375_v29 }
  0x16   :  { %410 = vmatpush3.bf16.msra.mxu1 %v407_v30  ;;  %380 = vmatprep.subr.bf16.mxu0 %v379_v35 }
  0x17   :  { %412 = vmatprep.subr.bf16.mxu1 %v411_v36 }
  0x19   :  { %382 = vmatpush3.bf16.msra.mxu0 %v379_v35 }
  0x1a   :  { %414 = vmatpush3.bf16.msra.mxu1 %v411_v36  ;;  %384 = vmatprep.subr.bf16.mxu0 %v383_v41 }
  0x1b   :  { %416 = vmatprep.subr.bf16.mxu1 %v415_v42 }
  0x1d   :  { %386 = vmatpush3.bf16.msra.mxu0 %v383_v41 }
  0x1e   :  { %418 = vmatpush3.bf16.msra.mxu1 %v415_v42  ;;  %388 = vmatprep.subr.bf16.mxu0 %v387_v47 }
  0x1f   :  { %420 = vmatprep.subr.bf16.mxu1 %v419_v48 }
  0x21   :  { %390 = vmatpush3.bf16.msra.mxu0 %v387_v47 }
  0x22   :  { %422 = vmatpush3.bf16.msra.mxu1 %v419_v48 }
  0x24   :  { %322 = vmatmul.mubr.f32.vlgmr.msra.gmra.mrb[0].mxu0 %v24_v49 }
  0x25   :  { %357 = vmatmul.mubr.f32.vlgmr.msra.gmra.mrb[0].mxu1 %v24_v49 }
  0xf7   :  { %v323_v52 = vpop.f32.mrb[0].mxu0 }
  0xf8   :  { %v120_v53 = vadd.f32 %v323_v52, %v251_v50  ;;  %v358_v54 = vpop.f32.mrb[0].mxu1  ;;  %v114_v55 = vpop.f32.mrb[1].mxu0 }
  0xf9   :  { %v218_v56 = vadd.f32 %v358_v54, %v252_v51  ;;  %v115_v57 = vadd.f32 %v251_v50, %v114_v55  ;;  %v212_v58 = vpop.f32.mrb[1].mxu1 }
  0xfa   :  { %v222_v59 = vmul.f32 0.5, %v120_v53  ;;  %v213_v60 = vadd.f32 %v252_v51, %v212_v58 }
  0xfb   :  { %v230_v61 = vmul.f32 0.5, %v218_v56  ;;  %v221_v62 = vmul.f32 0.5, %v115_v57 }
  0xfc   :  { %423 = vtanh.f32 %v222_v59  ;;  %v229_v63 = vmul.f32 0.5, %v213_v60 }
  0xfd   :  { %425 = vtanh.f32 %v230_v61 }
  0xfe   :  { %427 = vtanh.f32 %v221_v62 }
  0xff   :  { %429 = vtanh.f32 %v229_v63 }
 0x106   :  { %v424_v0 = vpop.eup %423 }
 0x107   :  { %v426_v1 = vpop.eup %425  ;;  %v226_v2 = vmul.f32 0.5, %v424_v0 }
 0x108   :  { %v428_v3 = vpop.eup %427  ;;  %v234_v5 = vmul.f32 0.5, %v426_v1 }
 0x109   :  { %v430_v6 = vpop.eup %429  ;;  %v228_v7 = vadd.f32 0.5, %v226_v2  ;;  %v225_v8 = vmul.f32 0.5, %v428_v3 }
 0x10a   :  { %v236_v9 = vadd.f32 0.5, %v234_v5  ;;  %v233_v11 = vmul.f32 0.5, %v430_v6 }
 0x10b   :  { %v242_v12 = vmul.f32 %v240_v4, %v228_v7  ;;  %v227_v13 = vadd.f32 0.5, %v225_v8 }
 0x10c   :  { %v238_v14 = vmul.f32 %v236_v9, %v24_v49  ;;  %v235_v15 = vadd.f32 0.5, %v233_v11 }
 0x10d   :  { %v241_v16 = vmul.f32 %v239_v10, %v227_v13 }
 0x10e   :  { %v244_v17 = vadd.f32 %v242_v12, %v238_v14  ;;  %v237_v18 = vmul.f32 %v235_v15, %v523_v26 }
 0x110   :  { %246 = vst [vmem:[%s597_s6 + $0x8] sm:$0xff] %v244_v17  ;;  %v243_v19 = vadd.f32 %v241_v16, %v237_v18 }
 0x112   :  { %245 = vst [vmem:[%s597_s6] sm:$0xff] %v243_v19 }

</bundles_post_ra>
